<compile_context>
chip_gen: v6e
topology: v6e:2x2x1
jax: 0.10.0
libtpu: 0.0.40
codegen_flags: <defaults>
</compile_context>

<pallas_src>
import jax
import jax.numpy as jnp
from jax.experimental import pallas as pl
from jax.experimental.pallas import tpu as pltpu


def _h_sigmoid_kernel(x_ref, o_ref):
    # ReLU6(x + 3) / 6  ==  clamp(x + 3, 0, 6) * (1/6), computed in f32.
    x = x_ref[...].astype(jnp.float32)
    y = jnp.clip(x + 3.0, 0.0, 6.0) * (1.0 / 6.0)
    o_ref[...] = y.astype(o_ref.dtype)


def h_sigmoid(x, *, target_block_bytes=2 * 1024 * 1024):
    """Elementwise hard-sigmoid. Accepts any shape (NCHW expected), floating dtypes."""
    orig_shape = x.shape
    orig_dtype = x.dtype
    n = x.size

    # Pick the widest lane-dense width that divides the flat size exactly so we
    # avoid any padding copy (extra full HBM passes) in the common case.
    lanes = None
    for cand in (512, 256, 128):
        if n % cand == 0:
            lanes = cand
            break

    x_flat = jnp.ravel(x)
    if lanes is None:
        # Ragged flat size (rare): pad once to a multiple of 128 lanes.
        lanes = 128
        n_pad = pl.cdiv(n, lanes) * lanes
        x_flat = jnp.concatenate(
            [x_flat, jnp.zeros((n_pad - n,), dtype=orig_dtype)])
        padded = True
    else:
        n_pad = n
        padded = False

    rows = n_pad // lanes
    x2d = x_flat.reshape(rows, lanes)

    # ~2 MiB per block; keep rows a multiple of 32 (bf16/int8 sublane packing).
    bytes_per_row = lanes * x.dtype.itemsize
    block_rows = max(32, (target_block_bytes // bytes_per_row) // 32 * 32)
    if block_rows >= rows:
        block_rows = rows  # single block spanning the full array is always legal
    grid = (pl.cdiv(rows, block_rows),)

    out2d = pl.pallas_call(
        _h_sigmoid_kernel,
        out_shape=jax.ShapeDtypeStruct((rows, lanes), orig_dtype),
        grid=grid,
        in_specs=[pl.BlockSpec((block_rows, lanes), lambda i: (i, 0))],
        out_specs=pl.BlockSpec((block_rows, lanes), lambda i: (i, 0)),
        compiler_params=pltpu.CompilerParams(
            dimension_semantics=("parallel",)),
    )(x2d)

    out_flat = out2d.reshape(-1)
    if padded:
        out_flat = out_flat[:n]
    return out_flat.reshape(orig_shape)


def h_sigmoid_ref(x):
    return jnp.clip(x + 3.0, 0.0, 6.0) / 6.0


if __name__ == "__main__":
    key = jax.random.PRNGKey(0)

    # NCHW input, values spanning the interesting range [-6, 6]
    x = jax.random.uniform(key, (2, 4, 16, 16), dtype=jnp.float32,
                           minval=-6.0, maxval=6.0)
    y = h_sigmoid(x)
    jax.block_until_ready(y)
    y_ref = h_sigmoid_ref(x)
    assert y.shape == x.shape and y.dtype == x.dtype
    assert jnp.allclose(y, y_ref, atol=1e-6, rtol=1e-6)

    # Ragged-size fallback path (flat size not a multiple of 128).
    x2 = jax.random.uniform(jax.random.PRNGKey(1), (2, 3, 7, 5),
                            dtype=jnp.float32, minval=-6.0, maxval=6.0)
    y2 = h_sigmoid(x2)
    jax.block_until_ready(y2)
    assert y2.shape == x2.shape and y2.dtype == x2.dtype
    assert jnp.allclose(y2, h_sigmoid_ref(x2), atol=1e-6, rtol=1e-6)

    print("KERNEL_OK")
</pallas_src>

<mosaic_0001>
module attributes {stable_mosaic.version = 11 : i64} {
  func.func @_h_sigmoid_kernel(%arg0: i32, %arg1: memref<4x512xf32, #tpu.memory_space<vmem>>, %arg2: memref<4x512xf32, #tpu.memory_space<vmem>>) attributes {dimension_semantics = [#tpu.dimension_semantics<parallel>], iteration_bounds = array<i64: 1>, scalar_prefetch = 0 : i64, scratch_operands = 0 : i64, tpu.core_type = #tpu.core_type<tc>, window_params = [{transform_indices = @transform_0, window_bounds = array<i64: 4, 512>}, {transform_indices = @transform_1, window_bounds = array<i64: 4, 512>}]} {
    %c0 = arith.constant 0 : index
    %c0_0 = arith.constant 0 : index
    %0 = vector.load %arg1[%c0, %c0_0] : memref<4x512xf32, #tpu.memory_space<vmem>>, vector<4x512xf32>
    %cst = arith.constant 3.000000e+00 : f32
    %1 = vector.broadcast %cst : f32 to vector<4x512xf32>
    %2 = arith.addf %0, %1 : vector<4x512xf32>
    %cst_1 = arith.constant 0.000000e+00 : f32
    %cst_2 = arith.constant 6.000000e+00 : f32
    %3 = vector.broadcast %cst_1 : f32 to vector<4x512xf32>
    %4 = arith.maximumf %3, %2 : vector<4x512xf32>
    %5 = vector.broadcast %cst_2 : f32 to vector<4x512xf32>
    %6 = arith.minimumf %5, %4 : vector<4x512xf32>
    %cst_3 = arith.constant 0.166666672 : f32
    %7 = vector.broadcast %cst_3 : f32 to vector<4x512xf32>
    %8 = arith.mulf %6, %7 : vector<4x512xf32>
    %c0_4 = arith.constant 0 : index
    %c0_5 = arith.constant 0 : index
    %9 = vector.load %arg2[%c0_4, %c0_5] : memref<4x512xf32, #tpu.memory_space<vmem>>, vector<4x512xf32>
    tpu.vector_store %arg2[%c0_4, %c0_5], %8 {strides = array<i32>} : memref<4x512xf32, #tpu.memory_space<vmem>>, vector<4x512xf32>,
    return
  }
  func.func @transform_0(%arg0: i32) -> (i32, i32) {
    %c0_i32 = arith.constant 0 : i32
    %c0_i32_0 = arith.constant 0 : i32
    return %arg0, %c0_i32 : i32, i32
  }
  func.func @transform_1(%arg0: i32) -> (i32, i32) {
    %c0_i32 = arith.constant 0 : i32
    %c0_i32_0 = arith.constant 0 : i32
    return %arg0, %c0_i32 : i32, i32
  }
}

</mosaic_0001>

<bundles_post_ra>
// kernel: tpu_custom_call.1
= control target key start
LH: loop header
LB: loop body
LE: loop exit
PB: predicated region body
PF: predicated region fallthrough
CT: control target
= control target key end

     0   :  { %6 = vsyncpa [#allocation3], 0  ;;  %s112_s0 = inlined_call_operand.hbm [shape: f32[4,512], index: 0, kind: input, shape index: {}]   ;;  %s113_s1 = inlined_call_operand.hbm [shape: f32[4,512], index: 1, kind: output, shape index: {}]  }
   0x1   :  { %7 = vsyncpa [#allocation4], 0  ;;  %s94_s6 = smov [#allocation2]  }
   0x2   :  { %s14_s7 = sshll.u32 %s94_s6, 4  ;;  %s15_s7 = int_to_ptr.vmem [resolvable:$true] %s14_s7 }
   0x3   :  { %s58_s8 = scalar_lea.vmem %s15_s7, 256  ;;  %p63_p1 = scmp.lt.s32.totalorder %s15_s7, %s15_s7 }
   0x4   :  { %p59_p0 = scmp.ne.s32.totalorder %s15_s7, %s58_s8  ;;  %p64_p2 = scmp.lt.s32.totalorder %s58_s8, %s58_s8 }
   0x6   :  { %p65_p3 = por %p64_p2, %p63_p1 }
   0x8   :  { %p66_p4 = pnand %p65_p3, %p59_p0 }
   0xa   :  { %69 = shalt.err (!%p66_p4)
}
   0xb   :  { %17 = dma.hbm_to_vmem [thread:$0]  %s112_s0, 256, %s15_s7, [#allocation3]  }
   0xc   :  { %90 = dma.done.wait [#allocation3], 256  }
   0xd   :  { %91 = vsyncadd [#allocation3], 4294967040  ;;  %v21_v0 = vld [vmem:[#allocation2] sm:$0xff]  ;;  %v22_v1 = vld [vmem:[#allocation2 + $0x8] sm:$0xff]  ;;  %s95_s11 = smov [#allocation5]  }
   0xe   :  { %v23_v2 = vadd.f32 3.0, %v21_v0  ;;  %v24_v3 = vadd.f32 3.0, %v22_v1  ;;  %s39_s12 = sshll.u32 %s95_s11, 4  ;;  %s40_s12 = int_to_ptr.vmem [resolvable:$true] %s39_s12 }
   0xf   :  { %s70_s13 = scalar_lea.vmem %s40_s12, 256  ;;  %p75_p6 = scmp.lt.s32.totalorder %s40_s12, %s40_s12 }
  0x10   :  { %v25_v4 = vmax.f32 %v23_v2, 0.0  ;;  %v26_v5 = vmax.f32 %v24_v3, 0.0  ;;  %p71_p5 = scmp.ne.s32.totalorder %s40_s12, %s70_s13  ;;  %p76_p7 = scmp.lt.s32.totalorder %s70_s13, %s70_s13 }
  0x12   :  { %v27_v6 = vmin.f32 %v25_v4, 6.0  ;;  %v28_v7 = vmin.f32 %v26_v5, 6.0  ;;  %p77_p8 = por %p76_p7, %p75_p6 }
  0x14   :  { %v29_v8 = vmul.f32 0.16666667, %v27_v6  ;;  %v30_v9 = vmul.f32 0.16666667, %v28_v7  ;;  %p78_p9 = pnand %p77_p8, %p71_p5 }
  0x16   :  { %31 = vst [vmem:[#allocation5] sm:$0xff] %v29_v8  ;;  %32 = vst [vmem:[#allocation5 + $0x8] sm:$0xff] %v30_v9 }
  0x17   :  { %81 = shalt.err (!%p78_p9)
}
  0x18   :  { %42 = dma.vmem_to_hbm [thread:$0]  %s40_s12, 256, %s113_s1, [#allocation4]  }
  0x19   :  { %92 = dma.done.wait [#allocation4], 256  }
  0x1a   :  { %93 = vsyncadd [#allocation4], 4294967040 }
  0x1b   :  { %46 = vsyncpa [#allocation3], 1 }
  0x1c   :  { %47 = vsyncpa [#allocation4], 1 }

</bundles_post_ra>
